<compile_context>
chip_gen: v7x
topology: tpu7x:2x2x1
jax: 0.10.0
libtpu: 0.0.40
codegen_flags: <defaults>
</compile_context>

<pallas_src>
import functools

import jax
import jax.numpy as jnp
from jax import lax
from jax.experimental import pallas as pl
from jax.experimental.pallas import tpu as pltpu


def _round_up(a, b):
    return (a + b - 1) // b * b


def _pick_tile(dim, want, align):
    """Largest tile <= want that is a multiple of `align` and divides `dim`;
    falls back to the full dim when `dim` is not align-divisible."""
    if dim % align != 0 or dim < align:
        return dim
    t = min(max((want // align) * align, align), dim)
    while dim % t != 0:
        t -= align
    return t


def _swiglu_kernel(x_ref, w_ref, v_ref, o_ref, g_acc, h_acc, *, approx_silu):
    # x_ref: (tm, tk) token tile; w_ref / v_ref: (tn, tk) weight tiles in
    # PyTorch (out, in) layout; o_ref: (tm, tn); g_acc / h_acc: f32 scratch.
    k = pl.program_id(2)

    @pl.when(k == 0)
    def _():
        g_acc[...] = jnp.zeros_like(g_acc)
        h_acc[...] = jnp.zeros_like(h_acc)

    # Contract x[-1] with weight[-1] (i.e. x @ W.T) -- NT layout fed to the MXU
    # directly, no wrapper transpose, f32 accumulation.
    dn = (((1,), (1,)), ((), ()))
    x = x_ref[...]
    g_acc[...] += lax.dot_general(x, w_ref[...], dimension_numbers=dn,
                                  preferred_element_type=jnp.float32)
    h_acc[...] += lax.dot_general(x, v_ref[...], dimension_numbers=dn,
                                  preferred_element_type=jnp.float32)

    @pl.when(k == pl.num_programs(2) - 1)
    def _():
        g = g_acc[...]
        h = h_acc[...]
        if approx_silu:
            # silu(g) = g / (1 + exp(-g)); the divide rides the EUP approx path.
            gate = g * pl.reciprocal(1.0 + jnp.exp(-g), approx=True)
        else:
            gate = g * jax.nn.sigmoid(g)
        o_ref[...] = (gate * h).astype(o_ref.dtype)


def swiglu(x, w, v, *, tm=256, tn=256, tk=None, mxu_dtype=jnp.bfloat16,
           vmem_budget_bytes=36 << 20):
    """x: (B, S, D); w, v: (D, D) in PyTorch Linear (out_features, in_features) layout."""
    B, S, D = x.shape
    assert w.shape == (D, D) and v.shape == (D, D)
    M = B * S
    out_dtype = x.dtype
    x2 = x.reshape(M, D)

    # Cast the streamed operands ONCE in the wrapper: halves HBM DMA and VMEM
    # tile footprint (not just the MXU feed).  Accumulation stays f32 in-kernel.
    if mxu_dtype is not None:
        x2 = x2.astype(mxu_dtype)
        w = w.astype(mxu_dtype)
        v = v.astype(mxu_dtype)
    bpe = jnp.dtype(x2.dtype).itemsize
    out_bpe = jnp.dtype(out_dtype).itemsize

    # Row tile (sublane axis): multiple of 8; ragged M handled by masked OOB
    # output writes (no wrapper pad / slice).
    tm_eff = min(_round_up(M, 8), _round_up(tm, 8))
    # Output-column tile: lane-dense multiple of 128 dividing D when possible.
    tn_eff = _pick_tile(D, tn, 128)

    def footprint(tk_):
        tiles = (tm_eff * tk_ + 2 * tn_eff * tk_) * bpe + tm_eff * tn_eff * out_bpe
        return 2 * tiles + 2 * tm_eff * tn_eff * 4   # double-buffered + f32 accumulators

    if tk is None:
        # Prefer tk == D: weight tiles then stay VMEM-resident across the whole
        # inner token sweep (each weight byte DMA'd exactly once per call).
        # Only fall back to K-tiling when that would blow the VMEM budget.
        candidates = [D]
        if D % 128 == 0:
            candidates += [t for t in (2048, 1024, 512, 256, 128)
                           if t < D and D % t == 0]
        tk_eff = candidates[-1]
        for t in candidates:
            if footprint(t) <= vmem_budget_bytes:
                tk_eff = t
                break
    else:
        tk_eff = tk

    grid = (pl.cdiv(D, tn_eff), pl.cdiv(M, tm_eff), pl.cdiv(D, tk_eff))

    out2 = pl.pallas_call(
        functools.partial(_swiglu_kernel, approx_silu=mxu_dtype is not None),
        out_shape=jax.ShapeDtypeStruct((M, D), out_dtype),
        grid_spec=pltpu.PrefetchScalarGridSpec(
            num_scalar_prefetch=0,
            grid=grid,
            in_specs=[
                pl.BlockSpec((tm_eff, tk_eff), lambda n, m, k: (m, k)),   # x tile
                pl.BlockSpec((tn_eff, tk_eff), lambda n, m, k: (n, k)),   # W tile (out, in)
                pl.BlockSpec((tn_eff, tk_eff), lambda n, m, k: (n, k)),   # V tile (out, in)
            ],
            out_specs=pl.BlockSpec((tm_eff, tn_eff), lambda n, m, k: (m, n)),
            scratch_shapes=[pltpu.VMEM((tm_eff, tn_eff), jnp.float32),
                            pltpu.VMEM((tm_eff, tn_eff), jnp.float32)],
        ),
        compiler_params=pltpu.CompilerParams(
            # N (weight) axis outer + parallel: megacore shards output columns,
            # so the dominant weight stream is not duplicated per TensorCore.
            dimension_semantics=("parallel", "parallel", "arbitrary"),
            vmem_limit_bytes=48 << 20,
        ),
    )(x2, w, v)

    return out2.reshape(B, S, D)


def swiglu_ref(x, w, v, cast_dtype=None):
    if cast_dtype is not None:
        x = x.astype(cast_dtype)
        w = w.astype(cast_dtype)
        v = v.astype(cast_dtype)
    g = jnp.einsum("bsd,od->bso", x, w, preferred_element_type=jnp.float32)
    h = jnp.einsum("bsd,od->bso", x, v, preferred_element_type=jnp.float32)
    return jax.nn.silu(g) * h


if __name__ == "__main__":
    # Small shape consistent with the module (embed_dim=32, batch=2, seq=8).
    B, S, D = 2, 8, 32
    key = jax.random.PRNGKey(0)
    kx, kw, kv = jax.random.split(key, 3)
    x = jax.random.normal(kx, (B, S, D), dtype=jnp.float32)
    w = jax.random.normal(kw, (D, D), dtype=jnp.float32) * 0.1   # (out, in)
    v = jax.random.normal(kv, (D, D), dtype=jnp.float32) * 0.1   # (out, in)

    # Exact-precision path (f32 end to end).
    out = swiglu(x, w, v, mxu_dtype=None)
    jax.block_until_ready(out)
    ref = swiglu_ref(x, w, v)
    assert out.shape == (B, S, D)
    assert jnp.allclose(out, ref, atol=1e-5, rtol=1e-5), \
        float(jnp.max(jnp.abs(out - ref)))

    # Default bf16-MXU path on a lane-aligned shape with a ragged token count
    # (exercises the multi-tile, masked-OOB row path: M=400 -> 2 row tiles of 256).
    B2, S2, D2 = 2, 200, 256
    kx2, kw2, kv2 = jax.random.split(jax.random.PRNGKey(1), 3)
    x_big = jax.random.normal(kx2, (B2, S2, D2), dtype=jnp.float32)
    w_big = jax.random.normal(kw2, (D2, D2), dtype=jnp.float32) * 0.05
    v_big = jax.random.normal(kv2, (D2, D2), dtype=jnp.float32) * 0.05

    out_big = swiglu(x_big, w_big, v_big)   # bf16 MXU inputs, f32 accumulation
    jax.block_until_ready(out_big)
    ref_big = swiglu_ref(x_big, w_big, v_big, cast_dtype=jnp.bfloat16)
    assert out_big.shape == (B2, S2, D2)
    assert jnp.allclose(out_big, jnp.asarray(ref_big, out_big.dtype),
                        atol=2e-2, rtol=2e-2), \
        float(jnp.max(jnp.abs(out_big - jnp.asarray(ref_big, out_big.dtype))))

    print("KERNEL_OK")
</pallas_src>

<mosaic_0001>
module attributes {stable_mosaic.version = 11 : i64} {
  func.func @_swiglu_kernel(%arg0: i32, %arg1: i32, %arg2: i32, %arg3: memref<16x32xf32, #tpu.memory_space<vmem>>, %arg4: memref<32x32xf32, #tpu.memory_space<vmem>>, %arg5: memref<32x32xf32, #tpu.memory_space<vmem>>, %arg6: memref<16x32xf32, #tpu.memory_space<vmem>>, %arg7: memref<16x32xf32, #tpu.memory_space<vmem>>, %arg8: memref<16x32xf32, #tpu.memory_space<vmem>>) attributes {dimension_semantics = [#tpu.dimension_semantics<parallel>, #tpu.dimension_semantics<parallel>, #tpu.dimension_semantics<arbitrary>], iteration_bounds = array<i64: 1, 1, 1>, scalar_prefetch = 0 : i64, scratch_operands = 2 : i64, tpu.core_type = #tpu.core_type<tc>, window_params = [{transform_indices = @transform_0, window_bounds = array<i64: 16, 32>}, {transform_indices = @transform_1, window_bounds = array<i64: 32, 32>}, {transform_indices = @transform_2, window_bounds = array<i64: 32, 32>}, {transform_indices = @transform_3, window_bounds = array<i64: 16, 32>}]} {
    %c0_i32 = arith.constant 0 : i32
    %0 = arith.cmpi eq, %arg2, %c0_i32 : i32
    %1 = arith.extui %0 : i1 to i32
    %c0_i32_0 = arith.constant 0 : i32
    %2 = arith.cmpi ne, %1, %c0_i32_0 : i32
    scf.if %2 {
      %cst_17 = arith.constant 0.000000e+00 : f32
      %17 = vector.broadcast %cst_17 : f32 to vector<16x32xf32>
      %c0_18 = arith.constant 0 : index
      %c0_19 = arith.constant 0 : index
      %18 = vector.load %arg7[%c0_18, %c0_19] : memref<16x32xf32, #tpu.memory_space<vmem>>, vector<16x32xf32>
      tpu.vector_store %arg7[%c0_18, %c0_19], %17 {strides = array<i32>} : memref<16x32xf32, #tpu.memory_space<vmem>>, vector<16x32xf32>,
      %cst_20 = arith.constant 0.000000e+00 : f32
      %19 = vector.broadcast %cst_20 : f32 to vector<16x32xf32>
      %c0_21 = arith.constant 0 : index
      %c0_22 = arith.constant 0 : index
      %20 = vector.load %arg8[%c0_21, %c0_22] : memref<16x32xf32, #tpu.memory_space<vmem>>, vector<16x32xf32>
      tpu.vector_store %arg8[%c0_21, %c0_22], %19 {strides = array<i32>} : memref<16x32xf32, #tpu.memory_space<vmem>>, vector<16x32xf32>,
    } else {
    }
    %c0 = arith.constant 0 : index
    %c0_1 = arith.constant 0 : index
    %3 = vector.load %arg3[%c0, %c0_1] : memref<16x32xf32, #tpu.memory_space<vmem>>, vector<16x32xf32>
    %c0_2 = arith.constant 0 : index
    %c0_3 = arith.constant 0 : index
    %4 = vector.load %arg7[%c0_2, %c0_3] : memref<16x32xf32, #tpu.memory_space<vmem>>, vector<16x32xf32>
    %c0_4 = arith.constant 0 : index
    %c0_5 = arith.constant 0 : index
    %5 = vector.load %arg4[%c0_4, %c0_5] : memref<32x32xf32, #tpu.memory_space<vmem>>, vector<32x32xf32>
    %cst = arith.constant dense<0.000000e+00> : vector<16x32xf32>
    %6 = tpu.matmul %3, %5, %cst {dimension_numbers = #tpu.dot_dimension_numbers<[1], [1], [0], [0], [0, 0, 1, 0], [], []>} : vector<16x32xf32>, vector<32x32xf32>, vector<16x32xf32> -> vector<16x32xf32>
    %7 = arith.addf %4, %6 : vector<16x32xf32>
    %c0_6 = arith.constant 0 : index
    %c0_7 = arith.constant 0 : index
    %8 = vector.load %arg7[%c0_6, %c0_7] : memref<16x32xf32, #tpu.memory_space<vmem>>, vector<16x32xf32>
    tpu.vector_store %arg7[%c0_6, %c0_7], %7 {strides = array<i32>} : memref<16x32xf32, #tpu.memory_space<vmem>>, vector<16x32xf32>,
    %c0_8 = arith.constant 0 : index
    %c0_9 = arith.constant 0 : index
    %9 = vector.load %arg8[%c0_8, %c0_9] : memref<16x32xf32, #tpu.memory_space<vmem>>, vector<16x32xf32>
    %c0_10 = arith.constant 0 : index
    %c0_11 = arith.constant 0 : index
    %10 = vector.load %arg5[%c0_10, %c0_11] : memref<32x32xf32, #tpu.memory_space<vmem>>, vector<32x32xf32>
    %cst_12 = arith.constant dense<0.000000e+00> : vector<16x32xf32>
    %11 = tpu.matmul %3, %10, %cst_12 {dimension_numbers = #tpu.dot_dimension_numbers<[1], [1], [0], [0], [0, 0, 1, 0], [], []>} : vector<16x32xf32>, vector<32x32xf32>, vector<16x32xf32> -> vector<16x32xf32>
    %12 = arith.addf %9, %11 : vector<16x32xf32>
    %c0_13 = arith.constant 0 : index
    %c0_14 = arith.constant 0 : index
    %13 = vector.load %arg8[%c0_13, %c0_14] : memref<16x32xf32, #tpu.memory_space<vmem>>, vector<16x32xf32>
    tpu.vector_store %arg8[%c0_13, %c0_14], %12 {strides = array<i32>} : memref<16x32xf32, #tpu.memory_space<vmem>>, vector<16x32xf32>,
    %c0_i32_15 = arith.constant 0 : i32
    %14 = arith.cmpi eq, %arg2, %c0_i32_15 : i32
    %15 = arith.extui %14 : i1 to i32
    %c0_i32_16 = arith.constant 0 : i32
    %16 = arith.cmpi ne, %15, %c0_i32_16 : i32
    scf.if %16 {
      %c0_17 = arith.constant 0 : index
      %c0_18 = arith.constant 0 : index
      %17 = vector.load %arg7[%c0_17, %c0_18] : memref<16x32xf32, #tpu.memory_space<vmem>>, vector<16x32xf32>
      %c0_19 = arith.constant 0 : index
      %c0_20 = arith.constant 0 : index
      %18 = vector.load %arg8[%c0_19, %c0_20] : memref<16x32xf32, #tpu.memory_space<vmem>>, vector<16x32xf32>
      %19 = arith.negf %17 : vector<16x32xf32>
      %20 = math.exp %19 : vector<16x32xf32>
      %cst_21 = arith.constant 1.000000e+00 : f32
      %21 = vector.broadcast %cst_21 : f32 to vector<16x32xf32>
      %22 = arith.addf %21, %20 : vector<16x32xf32>
      %23 = arith.divf %21, %22 : vector<16x32xf32>
      %24 = arith.mulf %17, %23 : vector<16x32xf32>
      %25 = arith.mulf %24, %18 : vector<16x32xf32>
      %c0_22 = arith.constant 0 : index
      %c0_23 = arith.constant 0 : index
      %26 = vector.load %arg6[%c0_22, %c0_23] : memref<16x32xf32, #tpu.memory_space<vmem>>, vector<16x32xf32>
      tpu.vector_store %arg6[%c0_22, %c0_23], %25 {strides = array<i32>} : memref<16x32xf32, #tpu.memory_space<vmem>>, vector<16x32xf32>,
    } else {
    }
    return
  }
  func.func @transform_0(%arg0: i32, %arg1: i32, %arg2: i32) -> (i32, i32) {
    %c0_i32 = arith.constant 0 : i32
    return %arg1, %arg2 : i32, i32
  }
  func.func @transform_1(%arg0: i32, %arg1: i32, %arg2: i32) -> (i32, i32) {
    %c0_i32 = arith.constant 0 : i32
    return %arg0, %arg2 : i32, i32
  }
  func.func @transform_2(%arg0: i32, %arg1: i32, %arg2: i32) -> (i32, i32) {
    %c0_i32 = arith.constant 0 : i32
    return %arg0, %arg2 : i32, i32
  }
  func.func @transform_3(%arg0: i32, %arg1: i32, %arg2: i32) -> (i32, i32) {
    %c0_i32 = arith.constant 0 : i32
    return %arg1, %arg0 : i32, i32
  }
}

</mosaic_0001>

<bundles_post_ra>
// kernel: tpu_custom_call.1
= control target key start
LH: loop header
LB: loop body
LE: loop exit
PB: predicated region body
PF: predicated region fallthrough
CT: control target
= control target key end

     0   :  { %8 = vsyncpa [#allocation5], 0  ;;  %s622_s0 = inlined_call_operand.hbm [shape: f32[16,32], index: 0, kind: input, shape index: {}]   ;;  %s623_s1 = inlined_call_operand.hbm [shape: f32[32,32], index: 1, kind: input, shape index: {}]   ;;  %s624_s2 = inlined_call_operand.hbm [shape: f32[32,32], index: 2, kind: input, shape index: {}]   ;;  %s625_s3 = inlined_call_operand.hbm [shape: f32[16,32], index: 3, kind: output, shape index: {}]  }
   0x1   :  { %9 = vsyncpa [#allocation8], 0 }
   0x2   :  { %10 = vsyncpa [#allocation6], 0  ;;  %s492_s12 = smov [#allocation7]   ;;  %s493_s14 = smov [#allocation4]  }
   0x3   :  { %s28_s13 = sshll.u32 %s492_s12, 4  ;;  %s16_s15 = sshll.u32 %s493_s14, 4  ;;  %s29_s13 = int_to_ptr.vmem [resolvable:$true] %s28_s13  ;;  %s519_s15 = int_to_ptr.vmem [resolvable:$true] %s16_s15 }
   0x4   :  { %s398_s18 = scalar_lea.hbm %s623_s1, 512 }
   0x5   :  { %p399_p0 = scmp.ne.s32.totalorder %s623_s1, %s398_s18  ;;  %p402_p1 = scmp.lt.u32.totalorder %s398_s18, %s623_s1 }
   0x7   :  { %p404_p2 = pnand %p402_p1, %p399_p0 }
   0x9   :  { %407 = shalt.err (!%p404_p2)
}
   0xa   :  { %s408_s23 = scalar_lea.vmem %s29_s13, 512  ;;  %p413_p4 = scmp.lt.s32.totalorder %s29_s13, %s29_s13 }
   0xb   :  { %p409_p3 = scmp.ne.s32.totalorder %s29_s13, %s408_s23  ;;  %p414_p5 = scmp.lt.s32.totalorder %s408_s23, %s408_s23 }
   0xd   :  { %p415_p6 = por %p414_p5, %p413_p4 }
   0xf   :  { %p416_p7 = pnand %p415_p6, %p409_p3 }
  0x11   :  { %419 = shalt.err (!%p416_p7)
}
  0x12   :  { %s494_s24 = smov 128   ;;  %s495_s25 = smov 8  }
  0x13   :  { %34 = dma.hbm_to_vmem [thread:$0]  %s623_s1, 512, %s29_s13, [#allocation8], %s494_s24, %s494_s24, %s495_s25  }
  0x14   :  { %s420_s30 = scalar_lea.hbm %s622_s0, 256 }
  0x15   :  { %p421_p8 = scmp.ne.s32.totalorder %s622_s0, %s420_s30  ;;  %p424_p9 = scmp.lt.u32.totalorder %s420_s30, %s622_s0 }
  0x17   :  { %p426_p10 = pnand %p424_p9, %p421_p8 }
  0x19   :  { %429 = shalt.err (!%p426_p10)
}
  0x1a   :  { %s430_s8 = scalar_lea.vmem %s519_s15, 256  ;;  %p435_p12 = scmp.lt.s32.totalorder %s519_s15, %s519_s15 }
  0x1b   :  { %p431_p11 = scmp.ne.s32.totalorder %s519_s15, %s430_s8  ;;  %p436_p13 = scmp.lt.s32.totalorder %s430_s8, %s430_s8 }
  0x1d   :  { %p437_p0 = por %p436_p13, %p435_p12 }
  0x1f   :  { %p438_p1 = pnand %p437_p0, %p431_p11 }
  0x21   :  { %441 = shalt.err (!%p438_p1)
}
  0x22   :  { %22 = dma.hbm_to_vmem [thread:$0]  %s622_s0, 256, %s519_s15, [#allocation5], %s494_s24, %s494_s24, %s495_s25  }
  0x23   :  { %s496_s10 = smov [#allocation9]   ;;  %s442_s14 = scalar_lea.hbm %s624_s2, 512 }
  0x24   :  { %s40_s11 = sshll.u32 %s496_s10, 4  ;;  %p443_p2 = scmp.ne.s32.totalorder %s624_s2, %s442_s14  ;;  %s41_s11 = int_to_ptr.vmem [resolvable:$true] %s40_s11 }
  0x25   :  { %p446_p3 = scmp.lt.u32.totalorder %s442_s14, %s624_s2 }
  0x27   :  { %p448_p4 = pnand %p446_p3, %p443_p2 }
  0x29   :  { %451 = shalt.err (!%p448_p4)
}
  0x2a   :  { %s452_s20 = scalar_lea.vmem %s41_s11, 512  ;;  %p457_p6 = scmp.lt.s32.totalorder %s41_s11, %s41_s11 }
  0x2b   :  { %p453_p5 = scmp.ne.s32.totalorder %s41_s11, %s452_s20  ;;  %p458_p7 = scmp.lt.s32.totalorder %s452_s20, %s452_s20 }
  0x2d   :  { %p459_p8 = por %p458_p7, %p457_p6 }
  0x2f   :  { %p460_p9 = pnand %p459_p8, %p453_p5 }
  0x31   :  { %463 = shalt.err (!%p460_p9)
}
  0x32   :  { %46 = dma.hbm_to_vmem [thread:$0]  %s624_s2, 512, %s41_s11, [#allocation8], %s494_s24, %s494_s24, %s495_s25  }
  0x33   :  { %486 = dma.done.wait [#allocation5], 256  }
  0x34   :  { %487 = vsyncadd [#allocation5], 4294967040 }
  0x35   :  { %488 = dma.done.wait [#allocation8], 1024  }
  0x36   :  { %489 = vsyncadd [#allocation8], 4294966272  ;;  %vm60_vm0 = vcmask 261120   ;;  %v497_v0 = vmov 0.0   ;;  %v69_v2 = vld [vmem:[#allocation7] sm:$0xff]  ;;  %v70_v3 = vld [vmem:[#allocation7 + $0x8] sm:$0xff] }
  0x37   :  { %62 = vst.msk [vmem:[#allocation2 + $0x8] sm:$0xff] %vm60_vm0, %v497_v0  ;;  %61 = vst.msk [vmem:[#allocation2] sm:$0xff] %vm60_vm0, %v497_v0  ;;  %v71_v4 = vld [vmem:[#allocation7 + $0x10] sm:$0xff]  ;;  %v359_v5 = vpack.c.bf16 %v70_v3, %v69_v2  ;;  %v72_v6 = vld [vmem:[#allocation7 + $0x18] sm:$0xff]  ;;  %s498_s2 = smov [#allocation10]  }
  0x38   :  { %63 = vst.msk [vmem:[#allocation3] sm:$0xff] %vm60_vm0, %v497_v0  ;;  %64 = vst.msk [vmem:[#allocation3 + $0x8] sm:$0xff] %vm60_vm0, %v497_v0  ;;  %v65_v7 = vld [vmem:[#allocation4] sm:$0xff]  ;;  %v365_v8 = vpack.c.bf16 %v72_v6, %v71_v4  ;;  %v173_v9 = vld [vmem:[#allocation9] sm:$0xff]  ;;  %s298_s21 = sshll.u32 %s498_s2, 4  ;;  %s299_s21 = int_to_ptr.vmem [resolvable:$true] %s298_s21 }
  0x39   :  { %vm577_vm1 = vmpackc.low %vm60_vm0, %vm60_vm0  ;;  %345 = vmatprep.mubr.msk.f32.mxu0 %vm60_vm0, %v65_v7  ;;  %v174_v10 = vld [vmem:[#allocation9 + $0x8] sm:$0xff]  ;;  %v175_v11 = vld [vmem:[#allocation9 + $0x10] sm:$0xff]  ;;  %356 = vmatprep.mubr.msk.f32.mxu1 %vm60_vm0, %v65_v7  ;;  %s464_s22 = scalar_lea.vmem %s299_s21, 256  ;;  %p469_p11 = scmp.lt.s32.totalorder %s299_s21, %s299_s21 }
  0x3a   :  { %361 = vmatprep.subr.msk.bf16.mxu0 %vm577_vm1, %v359_v5  ;;  %v371_v12 = vpack.c.bf16 %v174_v10, %v173_v9  ;;  %v176_v13 = vld [vmem:[#allocation9 + $0x18] sm:$0xff]  ;;  %p465_p10 = scmp.ne.s32.totalorder %s299_s21, %s464_s22  ;;  %p470_p12 = scmp.lt.s32.totalorder %s464_s22, %s464_s22 }
  0x3b   :  { %364 = vmatpush3.bf16.xpose.msk.msra.mxu0 %vm577_vm1, %v359_v5  ;;  %v377_v14 = vpack.c.bf16 %v176_v13, %v175_v11  ;;  %v66_v15 = vld [vmem:[#allocation4 + $0x8] sm:$0xff] }
  0x3c   :  { %367 = vmatprep.subr.msk.bf16.mxu0 %vm577_vm1, %v365_v8  ;;  %373 = vmatprep.subr.msk.bf16.mxu1 %vm577_vm1, %v371_v12  ;;  %p471_p13 = por %p470_p12, %p469_p11 }
  0x3d   :  { %376 = vmatpush3.bf16.xpose.msk.msra.mxu1 %vm577_vm1, %v371_v12 }
  0x3e   :  { %379 = vmatprep.subr.msk.bf16.mxu1 %vm577_vm1, %v377_v14  ;;  %v68_v16 = vld [vmem:[#allocation2 + $0x8] sm:$0xff]  ;;  %v67_v17 = vld [vmem:[#allocation2] sm:$0xff]  ;;  %p472_p0 = pnand %p471_p13, %p465_p10 }
  0x3f   :  { %v172_v19 = vld [vmem:[#allocation3 + $0x8] sm:$0xff]  ;;  %v171_v22 = vld [vmem:[#allocation3] sm:$0xff] }
  0x43   :  { %370 = vmatpush3.bf16.xpose.msk.msra.mxu0 %vm577_vm1, %v365_v8 }
  0x45   :  { %382 = vmatpush3.bf16.xpose.msk.msra.mxu1 %vm577_vm1, %v377_v14 }
  0x4a   :  { %346 = vmatmul.mubr.msk.f32.vlgmr.msra.gmra.mrb[0].mxu0 %vm60_vm0, %v66_v15 }
  0x4c   :  { %357 = vmatmul.mubr.msk.f32.vlgmr.msra.gmra.mrb[0].mxu1 %vm60_vm0, %v66_v15 }
 0x11d   :  { %v347_v18 = vpop.f32.mrb[0].mxu0 }
 0x11e   :  { %v168_v20 = vadd.f32 %v347_v18, %v68_v16  ;;  %v158_v21 = vpop.f32.mrb[1].mxu0 }
 0x11f   :  { %v167_v23 = vadd.f32 %v158_v21, %v67_v17  ;;  %v358_v24 = vpop.f32.mrb[0].mxu1 }
 0x120   :  { %170 = vst.msk [vmem:[#allocation2 + $0x8] sm:$0xff] %vm60_vm0, %v168_v20  ;;  %v265_v25 = vadd.f32 %v358_v24, %v172_v19  ;;  %v255_v26 = vpop.f32.mrb[1].mxu1 }
 0x121   :  { %169 = vst.msk [vmem:[#allocation2] sm:$0xff] %vm60_vm0, %v167_v23  ;;  %v264_v27 = vadd.f32 %v255_v26, %v171_v22 }
 0x122   :  { %267 = vst.msk [vmem:[#allocation3 + $0x8] sm:$0xff] %vm60_vm0, %v265_v25 }
 0x123   :  { %266 = vst.msk [vmem:[#allocation3] sm:$0xff] %vm60_vm0, %v264_v27 }
 0x127   :  { %v272_v28 = vld [vmem:[#allocation2 + $0x8] sm:$0xff] }
 0x128   :  { %v271_v29 = vld [vmem:[#allocation2] sm:$0xff]  ;;  %v324_v30 = vmul.f32 -1.442695, %v272_v28 }
 0x129   :  { %v323_v31 = vmul.f32 -1.442695, %v271_v29  ;;  %v274_v37 = vld [vmem:[#allocation3 + $0x8] sm:$0xff] }
 0x12a   :  { %390 = vpow2.f32 %v324_v30  ;;  %v273_v39 = vld [vmem:[#allocation3] sm:$0xff] }
 0x12b   :  { %392 = vpow2.f32 %v323_v31 }
 0x134   :  { %v391_v32 = vpop.eup %390 }
 0x135   :  { %v393_v33 = vpop.eup %392  ;;  %v282_v34 = vadd.f32 1.0, %v391_v32 }
 0x136   :  { %v281_v35 = vadd.f32 1.0, %v393_v33 }
 0x137   :  { %394 = vrcp.f32 %v282_v34 }
 0x138   :  { %396 = vrcp.f32 %v281_v35 }
 0x141   :  { %v395_v36 = vpop.eup %394 }
 0x142   :  { %v397_v38 = vpop.eup %396  ;;  %v288_v40 = vmul.f32 %v395_v36, %v272_v28 }
 0x143   :  { %v287_v41 = vmul.f32 %v397_v38, %v271_v29 }
 0x144   :  { %v290_v42 = vmul.f32 %v288_v40, %v274_v37 }
 0x145   :  { %v289_v43 = vmul.f32 %v287_v41, %v273_v39 }
 0x146   :  { %292 = vst.msk [vmem:[#allocation10 + $0x8] sm:$0xff] %vm60_vm0, %v290_v42 }
 0x147   :  { %291 = vst.msk [vmem:[#allocation10] sm:$0xff] %vm60_vm0, %v289_v43 }
 0x148   :  { %475 = shalt.err (!%p472_p0)
}
 0x149   :  { %s476_s27 = scalar_lea.hbm %s625_s3, 256 }
 0x14a   :  { %p477_p1 = scmp.ne.s32.totalorder %s625_s3, %s476_s27  ;;  %p480_p2 = scmp.lt.u32.totalorder %s476_s27, %s625_s3 }
 0x14c   :  { %p482_p3 = pnand %p480_p2, %p477_p1 }
 0x14e   :  { %485 = shalt.err (!%p482_p3)
}
 0x14f   :  { %304 = dma.vmem_to_hbm [thread:$0]  %s299_s21, 256, %s625_s3, [#allocation6], %s494_s24, %s494_s24, %s495_s25  }
 0x150   :  { %490 = dma.done.wait [#allocation6], 256  }
 0x151   :  { %491 = vsyncadd [#allocation6], 4294967040 }
 0x152   :  { %308 = vsyncpa [#allocation5], 1 }
 0x153   :  { %309 = vsyncpa [#allocation8], 1 }
 0x154   :  { %310 = vsyncpa [#allocation6], 1 }

</bundles_post_ra>
